<compile_context>
chip_gen: v7x
topology: tpu7x:2x2x1
jax: 0.10.0
libtpu: 0.0.40
codegen_flags: <defaults>
</compile_context>

<pallas_src>
from functools import partial

import jax
import jax.numpy as jnp
from jax import lax
from jax.experimental import pallas as pl
from jax.experimental.pallas import tpu as pltpu

MARGIN = 2.0
EPS = 1e-6
_LANE_CHUNK = 256                    # lane-chunk width for the D reduction
_VMEM_LIMIT = 32 * 1024 * 1024       # explicit scoped-VMEM budget (safe on v5e)


def _contrastive_cos_kernel(x1_ref, x2_ref, lab_ref, out_ref, *, total_b, tb, chunk):
    i = pl.program_id(0)
    rows, d = x1_ref.shape

    # Single pass over lane-chunks of D, accumulating three (TB,1) partials.
    dot = jnp.zeros((rows, 1), jnp.float32)
    s1 = jnp.zeros((rows, 1), jnp.float32)
    s2 = jnp.zeros((rows, 1), jnp.float32)
    for start in range(0, d, chunk):          # static trip count, static slices
        w = min(chunk, d - start)
        a = x1_ref[:, start:start + w].astype(jnp.float32)
        b = x2_ref[:, start:start + w].astype(jnp.float32)
        dot = dot + jnp.sum(a * b, axis=1, keepdims=True)
        s1 = s1 + jnp.sum(a * a, axis=1, keepdims=True)
        s2 = s2 + jnp.sum(b * b, axis=1, keepdims=True)

    lab = lab_ref[...].astype(jnp.float32)    # (TB, 1)

    # PyTorch clamps the product of norms:
    #   cos = dot / max(||x1||*||x2||, eps) == dot * rsqrt(max(s1*s2, eps^2))
    inv = lax.rsqrt(jnp.maximum(s1 * s2, EPS * EPS))     # EUP
    cs = dot * inv + 1.0

    pos = (1.0 - lab) * cs * cs
    neg = jnp.maximum(MARGIN - cs, 0.0)
    per_row = pos + lab * neg * neg           # (TB, 1)

    # Zero the undefined rows of a ragged final block (no wrapper padding).
    row = i * tb + lax.broadcasted_iota(jnp.int32, per_row.shape, 0)
    per_row = jnp.where(row < total_b, per_row, 0.0)

    tile_sum = jnp.sum(per_row, keepdims=True)               # (1, 1)
    out_ref[...] = jnp.broadcast_to(tile_sum, out_ref.shape)  # lane-dense (8,128)


def _round_up(x, m):
    return -(-x // m) * m


def _choose_tb(B, D, itemsize):
    """Row-tile: ~2 MiB per input block, multiple of dtype sublane packing."""
    packing = 8 * max(1, 4 // itemsize)       # 8 f32 / 16 bf16 / 32 int8-fp8
    target_bytes = 2 << 20
    tb = target_bytes // max(1, D * itemsize)
    tb = max(packing, min(8192, tb))
    tb = max(packing, (tb // packing) * packing)
    tb = min(tb, _round_up(B, packing))       # never bigger than the padded batch
    return tb, packing


def contrastive_loss_cos(output1, output2, label, *, tb=None):
    """output1, output2: (B, D); label: (B,) or (B,1) -> scalar f32 loss."""
    B, D = output1.shape
    label2d = jnp.reshape(label, (B, 1)).astype(jnp.float32)

    itemsize = jnp.dtype(output1.dtype).itemsize
    tb_auto, packing = _choose_tb(B, D, itemsize)
    tb = tb_auto if tb is None else max(packing, _round_up(tb, packing))

    nt = pl.cdiv(B, tb)
    chunk = min(_LANE_CHUNK, D)

    cost = pl.CostEstimate(
        flops=8 * B * D + 16 * B,
        transcendentals=B,
        bytes_accessed=2 * B * D * itemsize + 4 * B + nt * 8 * 128 * 4,
    )

    partials = pl.pallas_call(
        partial(_contrastive_cos_kernel, total_b=B, tb=tb, chunk=chunk),
        out_shape=jax.ShapeDtypeStruct((nt * 8, 128), jnp.float32),
        grid=(nt,),
        in_specs=[
            pl.BlockSpec((tb, D), lambda i: (i, 0)),
            pl.BlockSpec((tb, D), lambda i: (i, 0)),
            pl.BlockSpec((tb, 1), lambda i: (i, 0)),
        ],
        out_specs=pl.BlockSpec((8, 128), lambda i: (i, 0)),
        compiler_params=pltpu.CompilerParams(
            dimension_semantics=("parallel",),
            vmem_limit_bytes=_VMEM_LIMIT,
        ),
        cost_estimate=cost,
    )(output1, output2, label2d)

    # Each tile broadcast its partial over its (8,128) block; pick one lane each.
    total = jnp.sum(partials.reshape(nt, 8, 128)[:, 0, 0])
    return total / jnp.float32(B)


def _reference(output1, output2, label):
    # pure-JAX reference mirroring the PyTorch forward (product-clamped eps)
    o1 = output1.astype(jnp.float32)
    o2 = output2.astype(jnp.float32)
    dot = jnp.sum(o1 * o2, axis=1)
    n1 = jnp.sqrt(jnp.sum(o1 * o1, axis=1))
    n2 = jnp.sqrt(jnp.sum(o2 * o2, axis=1))
    cos = dot / jnp.maximum(n1 * n2, EPS)
    cs = cos + 1.0
    lab = label.astype(jnp.float32)
    return jnp.mean((1.0 - lab) * cs ** 2
                    + lab * jnp.maximum(MARGIN - cs, 0.0) ** 2)


if __name__ == "__main__":
    # Case 1: small, single tile (B=8, D=32), f32
    k1, k2, k3 = jax.random.split(jax.random.PRNGKey(0), 3)
    B, D = 8, 32
    o1 = jax.random.normal(k1, (B, D), dtype=jnp.float32)
    o2 = jax.random.normal(k2, (B, D), dtype=jnp.float32)
    lab = jax.random.bernoulli(k3, 0.5, (B,)).astype(jnp.float32)
    loss = contrastive_loss_cos(o1, o2, lab)
    jax.block_until_ready(loss)
    ref = _reference(o1, o2, lab)
    assert jnp.allclose(loss, ref, atol=1e-5, rtol=1e-5), (loss, ref)

    # Case 2: multi-tile + ragged batch, no wrapper padding (B=200, tb=64)
    k4, k5, k6 = jax.random.split(jax.random.PRNGKey(1), 3)
    B2, D2 = 200, 128
    p1 = jax.random.normal(k4, (B2, D2), dtype=jnp.float32)
    p2 = jax.random.normal(k5, (B2, D2), dtype=jnp.float32)
    lab2 = jax.random.bernoulli(k6, 0.5, (B2,)).astype(jnp.float32)
    loss2 = contrastive_loss_cos(p1, p2, lab2, tb=64)
    jax.block_until_ready(loss2)
    ref2 = _reference(p1, p2, lab2)
    assert jnp.allclose(loss2, ref2, atol=1e-5, rtol=1e-5), (loss2, ref2)

    # Case 3: bf16 inputs (exercises packing-aware tile rounding, ragged block)
    k7, k8, k9 = jax.random.split(jax.random.PRNGKey(2), 3)
    B3, D3 = 50, 96
    q1 = jax.random.normal(k7, (B3, D3), dtype=jnp.bfloat16)
    q2 = jax.random.normal(k8, (B3, D3), dtype=jnp.bfloat16)
    lab3 = jax.random.bernoulli(k9, 0.5, (B3,)).astype(jnp.float32)
    loss3 = contrastive_loss_cos(q1, q2, lab3)
    jax.block_until_ready(loss3)
    ref3 = _reference(q1, q2, lab3)
    assert jnp.allclose(loss3, ref3, atol=1e-4, rtol=1e-4), (loss3, ref3)

    # Case 4: D larger than the lane chunk with a ragged remainder (D=600)
    ka, kb, kc = jax.random.split(jax.random.PRNGKey(3), 3)
    B4, D4 = 24, 600
    r1 = jax.random.normal(ka, (B4, D4), dtype=jnp.float32)
    r2 = jax.random.normal(kb, (B4, D4), dtype=jnp.float32)
    lab4 = jax.random.bernoulli(kc, 0.5, (B4,)).astype(jnp.float32)
    loss4 = contrastive_loss_cos(r1, r2, lab4)
    jax.block_until_ready(loss4)
    ref4 = _reference(r1, r2, lab4)
    assert jnp.allclose(loss4, ref4, atol=1e-5, rtol=1e-5), (loss4, ref4)

    print("KERNEL_OK")
</pallas_src>

<mosaic_0001>
module attributes {stable_mosaic.version = 11 : i64} {
  func.func @_contrastive_cos_kernel(%arg0: i32, %arg1: memref<8x32xf32, #tpu.memory_space<vmem>>, %arg2: memref<8x32xf32, #tpu.memory_space<vmem>>, %arg3: memref<8x1xf32, #tpu.memory_space<vmem>>, %arg4: memref<8x128xf32, #tpu.memory_space<vmem>>) attributes {dimension_semantics = [#tpu.dimension_semantics<parallel>], iteration_bounds = array<i64: 1>, scalar_prefetch = 0 : i64, scratch_operands = 0 : i64, tpu.core_type = #tpu.core_type<tc>, window_params = [{transform_indices = @transform_0, window_bounds = array<i64: 8, 32>}, {transform_indices = @transform_1, window_bounds = array<i64: 8, 32>}, {transform_indices = @transform_2, window_bounds = array<i64: 8, 1>}, {transform_indices = @transform_3, window_bounds = array<i64: 8, 128>}]} {
    %cst = arith.constant 0.000000e+00 : f32
    %0 = vector.broadcast %cst : f32 to vector<8x1xf32>
    %cst_0 = arith.constant 0.000000e+00 : f32
    %1 = vector.broadcast %cst_0 : f32 to vector<8x1xf32>
    %cst_1 = arith.constant 0.000000e+00 : f32
    %2 = vector.broadcast %cst_1 : f32 to vector<8x1xf32>
    %c0 = arith.constant 0 : index
    %c0_2 = arith.constant 0 : index
    %3 = vector.load %arg1[%c0, %c0_2] : memref<8x32xf32, #tpu.memory_space<vmem>>, vector<8x32xf32>
    %c0_3 = arith.constant 0 : index
    %c0_4 = arith.constant 0 : index
    %4 = vector.load %arg2[%c0_3, %c0_4] : memref<8x32xf32, #tpu.memory_space<vmem>>, vector<8x32xf32>
    %5 = arith.mulf %3, %4 : vector<8x32xf32>
    %cst_5 = arith.constant dense<0.000000e+00> : vector<8xf32>
    %6 = vector.multi_reduction <add>, %5, %cst_5 [1] : vector<8x32xf32> to vector<8xf32>
    %7 = vector.shape_cast %6 : vector<8xf32> to vector<8x1xf32>
    %8 = arith.addf %0, %7 : vector<8x1xf32>
    %9 = arith.mulf %3, %3 : vector<8x32xf32>
    %cst_6 = arith.constant dense<0.000000e+00> : vector<8xf32>
    %10 = vector.multi_reduction <add>, %9, %cst_6 [1] : vector<8x32xf32> to vector<8xf32>
    %11 = vector.shape_cast %10 : vector<8xf32> to vector<8x1xf32>
    %12 = arith.addf %1, %11 : vector<8x1xf32>
    %13 = arith.mulf %4, %4 : vector<8x32xf32>
    %cst_7 = arith.constant dense<0.000000e+00> : vector<8xf32>
    %14 = vector.multi_reduction <add>, %13, %cst_7 [1] : vector<8x32xf32> to vector<8xf32>
    %15 = vector.shape_cast %14 : vector<8xf32> to vector<8x1xf32>
    %16 = arith.addf %2, %15 : vector<8x1xf32>
    %c0_8 = arith.constant 0 : index
    %c0_9 = arith.constant 0 : index
    %17 = vector.load %arg3[%c0_8, %c0_9] : memref<8x1xf32, #tpu.memory_space<vmem>>, vector<8x1xf32>
    %18 = arith.mulf %12, %16 : vector<8x1xf32>
    %cst_10 = arith.constant 9.99999996E-13 : f32
    %19 = vector.broadcast %cst_10 : f32 to vector<8x1xf32>
    %20 = arith.maximumf %18, %19 : vector<8x1xf32>
    %21 = math.rsqrt %20 : vector<8x1xf32>
    %22 = arith.mulf %8, %21 : vector<8x1xf32>
    %cst_11 = arith.constant 1.000000e+00 : f32
    %23 = vector.broadcast %cst_11 : f32 to vector<8x1xf32>
    %24 = arith.addf %22, %23 : vector<8x1xf32>
    %cst_12 = arith.constant 1.000000e+00 : f32
    %25 = vector.broadcast %cst_12 : f32 to vector<8x1xf32>
    %26 = arith.subf %25, %17 : vector<8x1xf32>
    %27 = arith.mulf %26, %24 : vector<8x1xf32>
    %28 = arith.mulf %27, %24 : vector<8x1xf32>
    %cst_13 = arith.constant 2.000000e+00 : f32
    %29 = vector.broadcast %cst_13 : f32 to vector<8x1xf32>
    %30 = arith.subf %29, %24 : vector<8x1xf32>
    %cst_14 = arith.constant 0.000000e+00 : f32
    %31 = vector.broadcast %cst_14 : f32 to vector<8x1xf32>
    %32 = arith.maximumf %30, %31 : vector<8x1xf32>
    %33 = arith.mulf %17, %32 : vector<8x1xf32>
    %34 = arith.mulf %33, %32 : vector<8x1xf32>
    %35 = arith.addf %28, %34 : vector<8x1xf32>
    %c8_i32 = arith.constant 8 : i32
    %36 = arith.muli %arg0, %c8_i32 : i32
    %37 = tpu.iota {dimensions = array<i32: 0>} : vector<8x1xi32>
    %38 = vector.broadcast %36 : i32 to vector<8x1xi32>
    %39 = arith.addi %38, %37 : vector<8x1xi32>
    %c8_i32_15 = arith.constant 8 : i32
    %40 = vector.broadcast %c8_i32_15 : i32 to vector<8x1xi32>
    %41 = arith.cmpi slt, %39, %40 : vector<8x1xi32>
    %cst_16 = arith.constant 0.000000e+00 : f32
    %42 = vector.broadcast %cst_16 : f32 to vector<8x1xf32>
    %43 = arith.select %41, %35, %42 : vector<8x1xi1>, vector<8x1xf32>
    %44 = vector.shape_cast %43 : vector<8x1xf32> to vector<1x8x1xf32>
    %cst_17 = arith.constant dense<0.000000e+00> : vector<1xf32>
    %45 = vector.multi_reduction <add>, %44, %cst_17 [1, 2] : vector<1x8x1xf32> to vector<1xf32>
    %46 = vector.shape_cast %45 : vector<1xf32> to vector<1x1x1xf32>
    %47 = vector.extract %46[0, 0, 0] : f32 from vector<1x1x1xf32>
    %48 = vector.broadcast %47 : f32 to vector<1x1xf32>
    %49 = vector.shape_cast %48 : vector<1x1xf32> to vector<1x1xf32>
    %50 = vector.broadcast %49 : vector<1x1xf32> to vector<8x128xf32>
    %c0_18 = arith.constant 0 : index
    %c0_19 = arith.constant 0 : index
    %51 = vector.load %arg4[%c0_18, %c0_19] : memref<8x128xf32, #tpu.memory_space<vmem>>, vector<8x128xf32>
    tpu.vector_store %arg4[%c0_18, %c0_19], %50 {strides = array<i32>} : memref<8x128xf32, #tpu.memory_space<vmem>>, vector<8x128xf32>,
    return
  }
  func.func @transform_0(%arg0: i32) -> (i32, i32) {
    %c0_i32 = arith.constant 0 : i32
    %c0_i32_0 = arith.constant 0 : i32
    return %arg0, %c0_i32 : i32, i32
  }
  func.func @transform_1(%arg0: i32) -> (i32, i32) {
    %c0_i32 = arith.constant 0 : i32
    %c0_i32_0 = arith.constant 0 : i32
    return %arg0, %c0_i32 : i32, i32
  }
  func.func @transform_2(%arg0: i32) -> (i32, i32) {
    %c0_i32 = arith.constant 0 : i32
    %c0_i32_0 = arith.constant 0 : i32
    return %arg0, %c0_i32 : i32, i32
  }
  func.func @transform_3(%arg0: i32) -> (i32, i32) {
    %c0_i32 = arith.constant 0 : i32
    %c0_i32_0 = arith.constant 0 : i32
    return %arg0, %c0_i32 : i32, i32
  }
}

</mosaic_0001>

<bundles_post_ra>
// kernel: tpu_custom_call.1
= control target key start
LH: loop header
LB: loop body
LE: loop exit
PB: predicated region body
PF: predicated region fallthrough
CT: control target
= control target key end

     0   :  { %8 = vsyncpa [#allocation3], 0  ;;  %s200_s0 = inlined_call_operand.vmem [shape: f32[8,32], index: 0, kind: input, shape index: {}]   ;;  %s201_s1 = inlined_call_operand.hbm [shape: f32[8,32], index: 1, kind: input, shape index: {}]   ;;  %s202_s2 = inlined_call_operand.vmem [shape: f32[8,1], index: 2, kind: input, shape index: {}]   ;;  %s203_s3 = inlined_call_operand.hbm [shape: f32[8,128], index: 3, kind: output, shape index: {}]  }
   0x1   :  { %9 = vsyncpa [#allocation4], 0  ;;  %s148_s12 = smov [#allocation2]   ;;  %s100_s16 = scalar_lea.hbm %s201_s1, 128 }
   0x2   :  { %s18_s13 = sshll.u32 %s148_s12, 4  ;;  %p101_p0 = scmp.ne.s32.totalorder %s201_s1, %s100_s16  ;;  %s19_s13 = int_to_ptr.vmem [resolvable:$true] %s18_s13 }
   0x3   :  { %p104_p1 = scmp.lt.u32.totalorder %s100_s16, %s201_s1 }
   0x5   :  { %p106_p2 = pnand %p104_p1, %p101_p0 }
   0x7   :  { %109 = shalt.err (!%p106_p2)
}
   0x8   :  { %s110_s21 = scalar_lea.vmem %s19_s13, 128  ;;  %p115_p4 = scmp.lt.s32.totalorder %s19_s13, %s19_s13 }
   0x9   :  { %p111_p3 = scmp.ne.s32.totalorder %s19_s13, %s110_s21  ;;  %p116_p5 = scmp.lt.s32.totalorder %s110_s21, %s110_s21 }
   0xb   :  { %p117_p6 = por %p116_p5, %p115_p4 }
   0xd   :  { %p118_p7 = pnand %p117_p6, %p111_p3 }
   0xf   :  { %121 = shalt.err (!%p118_p7)
}
  0x10   :  { %21 = dma.hbm_to_vmem [thread:$0]  %s201_s1, 128, %s19_s13, [#allocation3]  }
  0x11   :  { %144 = dma.done.wait [#allocation3], 128  }
  0x12   :  { %145 = vsyncadd [#allocation3], 4294967168  ;;  %v27_v0 = vld [vmem:[%s200_s0] sm:$0xff]  ;;  %vm30_vm0 = vcmask 261120   ;;  %vm66_vm1 = vcmask 7168  }
  0x13   :  { %v28_v1 = vld [vmem:[#allocation2] sm:$0xff]  ;;  %v35_v2 = vmul.f32 %v27_v0, %v27_v0 }
  0x14   :  { %v40_v3 = vmul.f32 %v28_v1, %v28_v1  ;;  %v29_v4 = vmul.f32 %v28_v1, %v27_v0  ;;  %v45_v14 = vld [vmem:[%s202_s2] sm:$0xff]  ;;  %s149_s2 = smov [#allocation5]  }
  0x15   :  { %v36_v5 = vsel %vm30_vm0, %v35_v2, 0.0  ;;  %v51_v16 = vsub.f32 1.0, %v45_v14  ;;  %s85_s26 = sshll.u32 %s149_s2, 4  ;;  %s86_s26 = int_to_ptr.vmem [resolvable:$true] %s85_s26 }
  0x16   :  { %v31_v6 = vsel %vm30_vm0, %v29_v4, 0.0  ;;  %37 = vadd.xlane.f32.xlu0 %v36_v5  ;;  %v41_v7 = vsel %vm30_vm0, %v40_v3, 0.0  ;;  %s122_s28 = scalar_lea.vmem %s86_s26, 128  ;;  %p127_p9 = scmp.lt.s32.totalorder %s86_s26, %s86_s26 }
  0x17   :  { %32 = vadd.xlane.f32.xlu1 %v31_v6  ;;  %p123_p8 = scmp.ne.s32.totalorder %s86_s26, %s122_s28  ;;  %p128_p10 = scmp.lt.s32.totalorder %s122_s28, %s122_s28 }
  0x19   :  { %p129_p11 = por %p128_p10, %p127_p9 }
  0x1a   :  { %42 = vadd.xlane.f32.xlu0 %v41_v7 }
  0x1b   :  { %p130_p12 = pnand %p129_p11, %p123_p8 }
  0xa3   :  { %v38_v8 = vpop.xlane.xlu0 %37 }
  0xa4   :  { %v33_v12 = vpop.xlane.xlu1 %32 }
  0xa7   :  { %v43_v9 = vpop.xlane.xlu0 %42 }
  0xa8   :  { %v46_v10 = vmul.f32 %v43_v9, %v38_v8 }
  0xaa   :  { %v47_v11 = vmax.f32 %v46_v10, 1e-12 }
  0xac   :  { %98 = vrsqrt.f32 %v47_v11 }
  0xb6   :  { %v99_v13 = vpop.eup %98 }
  0xb7   :  { %v49_v15 = vmul.f32 %v99_v13, %v33_v12 }
  0xb9   :  { %v50_v17 = vadd.f32 1.0, %v49_v15 }
  0xbb   :  { %v54_v18 = vsub.f32 2.0, %v50_v17  ;;  %v52_v19 = vmul.f32 %v51_v16, %v50_v17 }
  0xbd   :  { %v55_v20 = vmax.f32 %v54_v18, 0.0  ;;  %v53_v22 = vmul.f32 %v52_v19, %v50_v17 }
  0xbf   :  { %v56_v21 = vmul.f32 %v55_v20, %v45_v14 }
  0xc1   :  { %v57_v23 = vmul.f32 %v56_v21, %v55_v20 }
  0xc3   :  { %v58_v24 = vadd.f32 %v57_v23, %v53_v22 }
  0xc5   :  { %v67_v25 = vsel %vm66_vm1, %v58_v24, 0.0 }
  0xc6   :  { %68 = vadd.xlane.f32.xlu1 %v67_v25 }
 0x153   :  { %v69_v26 = vpop.xlane.xlu1 %68 }
 0x154   :  { %v70_v27 = vrot.slane %v69_v26, 4 }
 0x156   :  { %v71_v28 = vadd.f32 %v70_v27, %v69_v26 }
 0x158   :  { %v72_v29 = vrot.slane %v71_v28, 2 }
 0x15a   :  { %v73_v30 = vadd.f32 %v72_v29, %v71_v28 }
 0x15c   :  { %v74_v31 = vrot.slane %v73_v30, 1 }
 0x15e   :  { %v75_v32 = vadd.f32 %v74_v31, %v73_v30 }
 0x160   :  { %94 = vpush %v75_v32 }
 0x191   :  { %s95_s27 = spop %94 }
 0x192   :  { %v77_v33 = vstv %s95_s27 }
 0x193   :  { %78 = vst [vmem:[#allocation5] sm:$0xff] %v77_v33 }
 0x194   :  { %133 = shalt.err (!%p130_p12)
}
 0x195   :  { %s134_s4 = scalar_lea.hbm %s203_s3, 128 }
 0x196   :  { %p135_p13 = scmp.ne.s32.totalorder %s203_s3, %s134_s4  ;;  %p138_p0 = scmp.lt.u32.totalorder %s134_s4, %s203_s3 }
 0x198   :  { %p140_p1 = pnand %p138_p0, %p135_p13 }
 0x19a   :  { %143 = shalt.err (!%p140_p1)
}
 0x19b   :  { %88 = dma.vmem_to_hbm [thread:$0]  %s86_s26, 128, %s203_s3, [#allocation4]  }
 0x19c   :  { %146 = dma.done.wait [#allocation4], 128  }
 0x19d   :  { %147 = vsyncadd [#allocation4], 4294967168 }
 0x19e   :  { %92 = vsyncpa [#allocation3], 1 }
 0x19f   :  { %93 = vsyncpa [#allocation4], 1 }

</bundles_post_ra>
